<compile_context>
chip_gen: v5e
topology: v5e:2x2
jax: 0.10.0
libtpu: 0.0.40
codegen_flags: <defaults>
</compile_context>

<pallas_src>
from typing import Sequence

import jax
import jax.numpy as jnp
from jax import lax
from jax.experimental import pallas as pl
from jax.experimental.pallas import tpu as pltpu

LANE = 128        # TPU lane width  (multi-tile output blocks are lane-aligned)
SUBLANE = 8       # TPU sublane width (batch tiles are sublane-aligned)
PALLAS_MIN_BATCH = 64   # below this, plain XLA beats pallas_call launch cost


def _round_up(x: int, m: int) -> int:
    return (x + m - 1) // m * m


# ------------------------------------------------------------------ kernel ---
def _make_critic_kernel(n_hidden: int, input_action: bool):
    """Refs: (state[, action], layer-1 w/b, hidden w/b..., head w/b, out).

    Weight/bias refs carry a leading size-1 ensemble block dim (selected by the
    inner grid axis); the output ref is (1, 1, TB) so the store is one
    unmasked, lane-dense row.
    """

    def kernel(*refs):
        out_ref = refs[-1]
        if input_action:
            s_ref, a_ref = refs[0], refs[1]
            w1s, w1a, b1 = refs[2], refs[3], refs[4]
            idx = 5
            # concat(state, action) @ W1 == state @ W1[:S] + action @ W1[S:]
            h = jnp.dot(s_ref[...], w1s[0], preferred_element_type=jnp.float32)
            h = h + jnp.dot(a_ref[...], w1a[0], preferred_element_type=jnp.float32)
        else:
            s_ref = refs[0]
            w1, b1 = refs[1], refs[2]
            idx = 3
            h = jnp.dot(s_ref[...], w1[0], preferred_element_type=jnp.float32)
        h = jnp.maximum(h + b1[0], 0.0)

        # Remaining hidden Linear+ReLU layers (trace-time unrolled).
        for _ in range(1, n_hidden):
            w, b = refs[idx], refs[idx + 1]
            idx += 2
            h = jnp.dot(h, w[0], preferred_element_type=jnp.float32)
            h = jnp.maximum(h + b[0], 0.0)

        # Head, transposed so the store is lane-dense (1, TB) instead of a
        # masked 1-wide column: (1, H) x (TB, H) contracted over H.
        w_head, b_head = refs[idx], refs[idx + 1]
        v = lax.dot_general(w_head[0], h, (((1,), (1,)), ((), ())),
                            preferred_element_type=jnp.float32)
        out_ref[0] = v + b_head[0]          # (1, TB) unmasked store

    return kernel


# ----------------------------------------------------------- batch tiling ----
def _batch_tiling(B: int, block_b: int):
    """Returns (TB, B_pad, n_tiles).  TB is sublane-aligned always and
    lane-aligned whenever more than one tile is used (lane-dense out blocks)."""
    B8 = _round_up(B, SUBLANE)
    n_tiles = pl.cdiv(B8, block_b)
    if n_tiles == 1 and B8 >= 2 * LANE:
        # v7x has 2 TensorCores: prefer >= 2 grid steps so the "parallel"
        # batch axis can be split, but only if the lane padding stays small.
        two_tile_pad = 2 * _round_up(pl.cdiv(B8, 2), LANE) - B8
        if two_tile_pad * 8 <= B8:
            n_tiles = 2
    if n_tiles == 1:
        return B8, B8, 1
    TB = _round_up(pl.cdiv(B8, n_tiles), LANE)
    return TB, n_tiles * TB, n_tiles


# -------------------------------------------------------- pure-JAX reference -
def critic_ref(params, state, action=None, input_action=True):
    x = jnp.concatenate([state, action], axis=-1) if input_action else state
    for w, b in params[:-1]:
        x = jnp.maximum(x @ w + b, 0.0)
    w, b = params[-1]
    return x @ w + b


# ----------------------------------------------------------------- wrappers --
def critic_ensemble_forward(params_list, state, action=None, *,
                            input_action=True, block_b=2048, use_pallas=None):
    """Evaluates E identically-shaped critics in a single pallas_call.

    params_list: list of E parameter lists, each [(w [in,out], b [1,out]), ...]
    with the last entry the 1-wide head.  Returns (E, B, 1).
    """
    E = len(params_list)
    n_hidden = len(params_list[0]) - 1
    B, state_dim = state.shape
    if input_action:
        assert action is not None

    if use_pallas is None:
        use_pallas = B >= PALLAS_MIN_BATCH
    if not use_pallas:
        # Tiny batches: pallas_call launch/DMA overhead dominates; use XLA.
        return jnp.stack([critic_ref(p, state, action, input_action)
                          for p in params_list])

    # ---- batch tiling (auto-pipelined; weights stay VMEM resident) ----------
    TB, B_pad, n_tiles = _batch_tiling(B, block_b)
    if B_pad != B:
        state = jnp.pad(state, ((0, B_pad - B), (0, 0)))
        if input_action:
            action = jnp.pad(action, ((0, B_pad - B), (0, 0)))
    grid = (n_tiles, E)   # inner axis = ensemble -> state tile DMA'd once/tile

    def batch_spec(ncols):
        return pl.BlockSpec((TB, ncols), lambda i, e: (i, 0))

    def weight_spec(a):
        # Constant over the batch axis, selected by the ensemble axis.
        return pl.BlockSpec((1,) + a.shape[1:], lambda i, e: (e, 0, 0))

    # Stack the E critics' parameters along a leading ensemble axis.
    stacked = []
    for l in range(n_hidden + 1):
        w = jnp.stack([p[l][0] for p in params_list])       # (E, in, out)
        b = jnp.stack([p[l][1] for p in params_list])       # (E, 1, out)
        stacked.append((w, b))

    inputs = [state]
    in_specs = [batch_spec(state_dim)]
    if input_action:
        action_dim = action.shape[1]
        inputs.append(action)
        in_specs.append(batch_spec(action_dim))

    # First layer (split into state/action halves: identical math to the
    # concat form, without a wrapper-side concat / extra HBM round trip).
    w1, b1 = stacked[0]
    first = (w1[:, :state_dim], w1[:, state_dim:], b1) if input_action else (w1, b1)
    for a in first:
        inputs.append(a)
        in_specs.append(weight_spec(a))

    # Remaining hidden layers.
    for w, b in stacked[1:-1]:
        inputs += [w, b]
        in_specs += [weight_spec(w), weight_spec(b)]

    # Head, pre-transposed to (E, 1, H) for the lane-dense transposed output.
    w_head, b_head = stacked[-1]
    w_head_t = jnp.swapaxes(w_head, 1, 2)                    # (E, 1, H)
    inputs += [w_head_t, b_head]
    in_specs += [weight_spec(w_head_t), weight_spec(b_head)]

    # ---- cost estimate -------------------------------------------------------
    dims = [params_list[0][0][0].shape[0]] + [w.shape[2] for w, _ in stacked]
    flops = 2 * E * B_pad * sum(di * do for di, do in zip(dims[:-1], dims[1:]))
    bytes_accessed = 4 * (sum(int(a.size) for a in inputs) + E * B_pad)
    cost = pl.CostEstimate(flops=flops, transcendentals=0,
                           bytes_accessed=bytes_accessed)

    out = pl.pallas_call(
        _make_critic_kernel(n_hidden, input_action),
        out_shape=jax.ShapeDtypeStruct((E, 1, B_pad), jnp.float32),
        grid=grid,
        in_specs=in_specs,
        out_specs=pl.BlockSpec((1, 1, TB), lambda i, e: (e, 0, i)),
        compiler_params=pltpu.CompilerParams(
            dimension_semantics=("parallel", "parallel")),
        cost_estimate=cost,
    )(*inputs)

    return jnp.swapaxes(out[:, :, :B], 1, 2)                 # (E, B, 1)


def critic_forward(params, state, action=None, *, input_action=True,
                   block_b=2048, use_pallas=None):
    out = critic_ensemble_forward([params], state, action,
                                  input_action=input_action,
                                  block_b=block_b, use_pallas=use_pallas)
    return out[0]                                            # (B, 1)


def critic_apply(params, state, action=None, input_action=True, **kw):
    return critic_forward(params, state, action, input_action=input_action, **kw)


# -------------------------------------------------------- parameter set up ---
def init_critic_params(key, state_dim, action_dim, hidden_sizes: Sequence[int],
                       input_action: bool):
    """Mimics nn.Linear default init; weights stored pre-transposed [in, out]."""
    input_size = state_dim + action_dim if input_action else state_dim
    sizes = [input_size] + list(hidden_sizes) + [1]
    keys = jax.random.split(key, 2 * (len(sizes) - 1))
    params = []
    for i in range(len(sizes) - 1):
        fan_in, fan_out = sizes[i], sizes[i + 1]
        bound = 1.0 / (fan_in ** 0.5)
        w = jax.random.uniform(keys[2 * i], (fan_in, fan_out), jnp.float32,
                               minval=-bound, maxval=bound)
        b = jax.random.uniform(keys[2 * i + 1], (1, fan_out), jnp.float32,
                               minval=-bound, maxval=bound)
        params.append((w, b))
    return params


# -------------------------------------------------------------------- main ---
if __name__ == "__main__":
    state_dim, action_dim = 12, 4
    hidden_sizes = [32, 32]

    key = jax.random.PRNGKey(0)
    k_p1, k_p2, k_p3, k_s, k_a, k_s2, k_s3, k_a3 = jax.random.split(key, 8)

    # Case 1: Q(s, a), tiny batch -> single tile; force the Pallas path.
    B = 8
    params_sa = init_critic_params(k_p1, state_dim, action_dim, hidden_sizes, True)
    state = jax.random.normal(k_s, (B, state_dim), jnp.float32)
    action = jax.random.normal(k_a, (B, action_dim), jnp.float32)
    value = jax.block_until_ready(
        critic_forward(params_sa, state, action, input_action=True,
                       use_pallas=True))
    expected = critic_ref(params_sa, state, action, input_action=True)
    assert value.shape == (B, 1)
    assert jnp.allclose(value, expected, atol=1e-5, rtol=1e-5)

    # Case 2: state-only V(s), ragged batch (exercises sublane padding).
    B2 = 13
    params_s = init_critic_params(k_p2, state_dim, action_dim, hidden_sizes, False)
    state2 = jax.random.normal(k_s2, (B2, state_dim), jnp.float32)
    value2 = jax.block_until_ready(
        critic_forward(params_s, state2, None, input_action=False,
                       use_pallas=True))
    expected2 = critic_ref(params_s, state2, None, input_action=False)
    assert value2.shape == (B2, 1)
    assert jnp.allclose(value2, expected2, atol=1e-5, rtol=1e-5)

    # Case 3: twin-Q ensemble in one call, multi-tile batch (grid = (3, 2)).
    B3 = 300
    params_q1 = init_critic_params(k_p1, state_dim, action_dim, hidden_sizes, True)
    params_q2 = init_critic_params(k_p3, state_dim, action_dim, hidden_sizes, True)
    state3 = jax.random.normal(k_s3, (B3, state_dim), jnp.float32)
    action3 = jax.random.normal(k_a3, (B3, action_dim), jnp.float32)
    values3 = jax.block_until_ready(
        critic_ensemble_forward([params_q1, params_q2], state3, action3,
                                input_action=True, block_b=128,
                                use_pallas=True))
    expected3 = jnp.stack([critic_ref(params_q1, state3, action3, True),
                           critic_ref(params_q2, state3, action3, True)])
    assert values3.shape == (2, B3, 1)
    assert jnp.allclose(values3, expected3, atol=1e-5, rtol=1e-5)

    print("KERNEL_OK")
</pallas_src>

<mosaic_0001>
module attributes {stable_mosaic.version = 11 : i64} {
  func.func @kernel(%arg0: i32, %arg1: i32, %arg2: memref<8x12xf32, #tpu.memory_space<vmem>>, %arg3: memref<8x4xf32, #tpu.memory_space<vmem>>, %arg4: memref<1x12x32xf32, #tpu.memory_space<vmem>>, %arg5: memref<1x4x32xf32, #tpu.memory_space<vmem>>, %arg6: memref<1x1x32xf32, #tpu.memory_space<vmem>>, %arg7: memref<1x32x32xf32, #tpu.memory_space<vmem>>, %arg8: memref<1x1x32xf32, #tpu.memory_space<vmem>>, %arg9: memref<1x1x32xf32, #tpu.memory_space<vmem>>, %arg10: memref<1x1x1xf32, #tpu.memory_space<vmem>>, %arg11: memref<1x1x8xf32, #tpu.memory_space<vmem>>) attributes {dimension_semantics = [#tpu.dimension_semantics<parallel>, #tpu.dimension_semantics<parallel>], iteration_bounds = array<i64: 1, 1>, scalar_prefetch = 0 : i64, scratch_operands = 0 : i64, tpu.core_type = #tpu.core_type<tc>, window_params = [{transform_indices = @transform_0, window_bounds = array<i64: 8, 12>}, {transform_indices = @transform_1, window_bounds = array<i64: 8, 4>}, {transform_indices = @transform_2, window_bounds = array<i64: 1, 12, 32>}, {transform_indices = @transform_3, window_bounds = array<i64: 1, 4, 32>}, {transform_indices = @transform_4, window_bounds = array<i64: 1, 1, 32>}, {transform_indices = @transform_5, window_bounds = array<i64: 1, 32, 32>}, {transform_indices = @transform_6, window_bounds = array<i64: 1, 1, 32>}, {transform_indices = @transform_7, window_bounds = array<i64: 1, 1, 32>}, {transform_indices = @transform_8, window_bounds = array<i64: 1, 1, 1>}, {transform_indices = @transform_9, window_bounds = array<i64: 1, 1, 8>}]} {
    %c0 = arith.constant 0 : index
    %c0_0 = arith.constant 0 : index
    %0 = vector.load %arg2[%c0, %c0_0] : memref<8x12xf32, #tpu.memory_space<vmem>>, vector<8x12xf32>
    %c0_1 = arith.constant 0 : index
    %c0_2 = arith.constant 0 : index
    %c0_3 = arith.constant 0 : index
    %1 = vector.load %arg4[%c0_1, %c0_2, %c0_3] : memref<1x12x32xf32, #tpu.memory_space<vmem>>, vector<1x12x32xf32>
    %2 = vector.shape_cast %1 : vector<1x12x32xf32> to vector<12x32xf32>
    %cst = arith.constant dense<0.000000e+00> : vector<8x32xf32>
    %3 = tpu.matmul %0, %2, %cst {dimension_numbers = #tpu.dot_dimension_numbers<[1], [0], [0], [1], [0, 0, 1, 1], [], []>} : vector<8x12xf32>, vector<12x32xf32>, vector<8x32xf32> -> vector<8x32xf32>
    %c0_4 = arith.constant 0 : index
    %c0_5 = arith.constant 0 : index
    %4 = vector.load %arg3[%c0_4, %c0_5] : memref<8x4xf32, #tpu.memory_space<vmem>>, vector<8x4xf32>
    %c0_6 = arith.constant 0 : index
    %c0_7 = arith.constant 0 : index
    %c0_8 = arith.constant 0 : index
    %5 = vector.load %arg5[%c0_6, %c0_7, %c0_8] : memref<1x4x32xf32, #tpu.memory_space<vmem>>, vector<1x4x32xf32>
    %6 = vector.shape_cast %5 : vector<1x4x32xf32> to vector<4x32xf32>
    %cst_9 = arith.constant dense<0.000000e+00> : vector<8x32xf32>
    %7 = tpu.matmul %4, %6, %cst_9 {dimension_numbers = #tpu.dot_dimension_numbers<[1], [0], [0], [1], [0, 0, 1, 1], [], []>} : vector<8x4xf32>, vector<4x32xf32>, vector<8x32xf32> -> vector<8x32xf32>
    %8 = arith.addf %3, %7 : vector<8x32xf32>
    %c0_10 = arith.constant 0 : index
    %c0_11 = arith.constant 0 : index
    %c0_12 = arith.constant 0 : index
    %9 = vector.load %arg6[%c0_10, %c0_11, %c0_12] : memref<1x1x32xf32, #tpu.memory_space<vmem>>, vector<1x1x32xf32>
    %10 = vector.shape_cast %9 : vector<1x1x32xf32> to vector<1x32xf32>
    %11 = vector.broadcast %10 : vector<1x32xf32> to vector<8x32xf32>
    %12 = arith.addf %8, %11 : vector<8x32xf32>
    %cst_13 = arith.constant 0.000000e+00 : f32
    %13 = vector.broadcast %cst_13 : f32 to vector<8x32xf32>
    %14 = arith.maximumf %12, %13 : vector<8x32xf32>
    %c0_14 = arith.constant 0 : index
    %c0_15 = arith.constant 0 : index
    %c0_16 = arith.constant 0 : index
    %15 = vector.load %arg7[%c0_14, %c0_15, %c0_16] : memref<1x32x32xf32, #tpu.memory_space<vmem>>, vector<1x32x32xf32>
    %16 = vector.shape_cast %15 : vector<1x32x32xf32> to vector<32x32xf32>
    %cst_17 = arith.constant dense<0.000000e+00> : vector<8x32xf32>
    %17 = tpu.matmul %14, %16, %cst_17 {dimension_numbers = #tpu.dot_dimension_numbers<[1], [0], [0], [1], [0, 0, 1, 1], [], []>} : vector<8x32xf32>, vector<32x32xf32>, vector<8x32xf32> -> vector<8x32xf32>
    %c0_18 = arith.constant 0 : index
    %c0_19 = arith.constant 0 : index
    %c0_20 = arith.constant 0 : index
    %18 = vector.load %arg8[%c0_18, %c0_19, %c0_20] : memref<1x1x32xf32, #tpu.memory_space<vmem>>, vector<1x1x32xf32>
    %19 = vector.shape_cast %18 : vector<1x1x32xf32> to vector<1x32xf32>
    %20 = vector.broadcast %19 : vector<1x32xf32> to vector<8x32xf32>
    %21 = arith.addf %17, %20 : vector<8x32xf32>
    %cst_21 = arith.constant 0.000000e+00 : f32
    %22 = vector.broadcast %cst_21 : f32 to vector<8x32xf32>
    %23 = arith.maximumf %21, %22 : vector<8x32xf32>
    %c0_22 = arith.constant 0 : index
    %c0_23 = arith.constant 0 : index
    %c0_24 = arith.constant 0 : index
    %24 = vector.load %arg9[%c0_22, %c0_23, %c0_24] : memref<1x1x32xf32, #tpu.memory_space<vmem>>, vector<1x1x32xf32>
    %25 = vector.shape_cast %24 : vector<1x1x32xf32> to vector<1x32xf32>
    %cst_25 = arith.constant dense<0.000000e+00> : vector<1x8xf32>
    %26 = tpu.matmul %25, %23, %cst_25 {dimension_numbers = #tpu.dot_dimension_numbers<[1], [1], [0], [0], [0, 0, 1, 0], [], []>} : vector<1x32xf32>, vector<8x32xf32>, vector<1x8xf32> -> vector<1x8xf32>
    %c0_26 = arith.constant 0 : index
    %c0_27 = arith.constant 0 : index
    %c0_28 = arith.constant 0 : index
    %27 = vector.load %arg10[%c0_26, %c0_27, %c0_28] : memref<1x1x1xf32, #tpu.memory_space<vmem>>, vector<1x1x1xf32>
    %28 = vector.shape_cast %27 : vector<1x1x1xf32> to vector<1x1xf32>
    %29 = vector.broadcast %28 : vector<1x1xf32> to vector<1x8xf32>
    %30 = arith.addf %26, %29 : vector<1x8xf32>
    %c0_29 = arith.constant 0 : index
    %c0_30 = arith.constant 0 : index
    %c0_31 = arith.constant 0 : index
    %31 = vector.load %arg11[%c0_29, %c0_30, %c0_31] : memref<1x1x8xf32, #tpu.memory_space<vmem>>, vector<1x1x8xf32>
    %32 = vector.shape_cast %31 : vector<1x1x8xf32> to vector<1x8xf32>
    %33 = vector.shape_cast %30 : vector<1x8xf32> to vector<1x1x8xf32>
    tpu.vector_store %arg11[%c0_29, %c0_30, %c0_31], %33 {strides = array<i32>} : memref<1x1x8xf32, #tpu.memory_space<vmem>>, vector<1x1x8xf32>,
    return
  }
  func.func @transform_0(%arg0: i32, %arg1: i32) -> (i32, i32) {
    %c0_i32 = arith.constant 0 : i32
    %c0_i32_0 = arith.constant 0 : i32
    return %arg0, %c0_i32 : i32, i32
  }
  func.func @transform_1(%arg0: i32, %arg1: i32) -> (i32, i32) {
    %c0_i32 = arith.constant 0 : i32
    %c0_i32_0 = arith.constant 0 : i32
    return %arg0, %c0_i32 : i32, i32
  }
  func.func @transform_2(%arg0: i32, %arg1: i32) -> (i32, i32, i32) {
    %c0_i32 = arith.constant 0 : i32
    %c0_i32_0 = arith.constant 0 : i32
    %c0_i32_1 = arith.constant 0 : i32
    return %arg1, %c0_i32, %c0_i32_0 : i32, i32, i32
  }
  func.func @transform_3(%arg0: i32, %arg1: i32) -> (i32, i32, i32) {
    %c0_i32 = arith.constant 0 : i32
    %c0_i32_0 = arith.constant 0 : i32
    %c0_i32_1 = arith.constant 0 : i32
    return %arg1, %c0_i32, %c0_i32_0 : i32, i32, i32
  }
  func.func @transform_4(%arg0: i32, %arg1: i32) -> (i32, i32, i32) {
    %c0_i32 = arith.constant 0 : i32
    %c0_i32_0 = arith.constant 0 : i32
    %c0_i32_1 = arith.constant 0 : i32
    return %arg1, %c0_i32, %c0_i32_0 : i32, i32, i32
  }
  func.func @transform_5(%arg0: i32, %arg1: i32) -> (i32, i32, i32) {
    %c0_i32 = arith.constant 0 : i32
    %c0_i32_0 = arith.constant 0 : i32
    %c0_i32_1 = arith.constant 0 : i32
    return %arg1, %c0_i32, %c0_i32_0 : i32, i32, i32
  }
  func.func @transform_6(%arg0: i32, %arg1: i32) -> (i32, i32, i32) {
    %c0_i32 = arith.constant 0 : i32
    %c0_i32_0 = arith.constant 0 : i32
    %c0_i32_1 = arith.constant 0 : i32
    return %arg1, %c0_i32, %c0_i32_0 : i32, i32, i32
  }
  func.func @transform_7(%arg0: i32, %arg1: i32) -> (i32, i32, i32) {
    %c0_i32 = arith.constant 0 : i32
    %c0_i32_0 = arith.constant 0 : i32
    %c0_i32_1 = arith.constant 0 : i32
    return %arg1, %c0_i32, %c0_i32_0 : i32, i32, i32
  }
  func.func @transform_8(%arg0: i32, %arg1: i32) -> (i32, i32, i32) {
    %c0_i32 = arith.constant 0 : i32
    %c0_i32_0 = arith.constant 0 : i32
    %c0_i32_1 = arith.constant 0 : i32
    return %arg1, %c0_i32, %c0_i32_0 : i32, i32, i32
  }
  func.func @transform_9(%arg0: i32, %arg1: i32) -> (i32, i32, i32) {
    %c0_i32 = arith.constant 0 : i32
    %c0_i32_0 = arith.constant 0 : i32
    return %arg1, %c0_i32, %arg0 : i32, i32, i32
  }
}

</mosaic_0001>

<bundles_post_ra>
// kernel: tpu_custom_call.1
= control target key start
LH: loop header
LB: loop body
LE: loop exit
PB: predicated region body
PF: predicated region fallthrough
CT: control target
= control target key end

     0   :  { %s318_s0 = inlined_call_operand.vmem [shape: f32[8,12], index: 0, kind: input, shape index: {}]   ;;  %s319_s1 = inlined_call_operand.vmem [shape: f32[8,4], index: 1, kind: input, shape index: {}]   ;;  %s320_s2 = inlined_call_operand.vmem [shape: f32[1,12,32], index: 2, kind: input, shape index: {}]   ;;  %s321_s3 = inlined_call_operand.vmem [shape: f32[1,4,32], index: 3, kind: input, shape index: {}]   ;;  %s322_s4 = inlined_call_operand.vmem [shape: f32[1,1,32], index: 4, kind: input, shape index: {}]   ;;  %s323_s5 = inlined_call_operand.vmem [shape: f32[1,32,32], index: 5, kind: input, shape index: {}]   ;;  %s324_s6 = inlined_call_operand.vmem [shape: f32[1,1,32], index: 6, kind: input, shape index: {}]   ;;  %s325_s7 = inlined_call_operand.vmem [shape: f32[1,1,32], index: 7, kind: input, shape index: {}]   ;;  %s326_s8 = inlined_call_operand.<no memory space> [shape: f32[1,1,1], index: 8, kind: input, shape index: {}]   ;;  %s327_s9 = inlined_call_operand.hbm [shape: f32[1,1,8], index: 9, kind: output, shape index: {}]  }
   0x1   :  { %v14_v0 = vstv %s326_s8 }
   0x2   :  { %15 = vst [vmem:[#allocation2] sm:$0x1] %v14_v0 }
   0x3   :  { %v37_v1 = vld [vmem:[%s320_s2 + $0x8] sm:$0xf]  ;;  %vm44_vm0 = vcmask 1043456   ;;  %v39_v2 = vld [vmem:[%s321_s3] sm:$0xf]  ;;  %vm40_vm1 = vcmask 31744  }
   0x4   :  { %v36_v3 = vld [vmem:[%s320_s2] sm:$0xff]  ;;  %188 = vmatpush.msk.msra.mxu1 %vm44_vm0, %v37_v1  ;;  %186 = vmatpush.msk.msra.mxu0 %vm44_vm0, %v39_v2  ;;  %vm68_vm2 = vcmask 97280  }
   0x5   :  { %v38_v4 = vld [vmem:[%s319_s1] sm:$0xff] }
   0x6   :  { %v35_v5 = vld [vmem:[%s318_s0] sm:$0xff]  ;;  %187 = vmatmul.msk.f32.vlgmr.msra.gmra.mxu0 %vm40_vm1, %v38_v4 }
   0x7   :  { %16 = vsyncpa [#allocation4], 0  ;;  %90 = vmatpush.msra.mxu1 %v36_v3  ;;  %v104_v6 = vld [vmem:[%s323_s5 + $0x18] sm:$0xff]  ;;  %v103_v7 = vld [vmem:[%s323_s5 + $0x10] sm:$0xff]  ;;  %vm109_vm3 = vcmask 261120   ;;  %v224_v17 = vmov 0  }
   0x8   :  { %189 = vmatmul.msk.f32.vlgmr.msra.gmra.mxu1 %vm68_vm2, %v35_v5  ;;  %125 = vmatpush.msra.mxu2 %v104_v6  ;;  %v102_v8 = vld [vmem:[%s323_s5 + $0x8] sm:$0xff]  ;;  %v101_v9 = vld [vmem:[%s323_s5] sm:$0xff]  ;;  %s225_s28 = smov [#allocation3]   ;;  %s177_s11 = sshll.u32 %s327_s9, 4  ;;  %vm168_vm4 = vcmask 57344   ;;  %s178_s11 = int_to_ptr.hbm [resolvable:$true] %s177_s11 }
   0x9   :  { %v196_v11 = vld [vmem:[%s322_s4] ss:$0 sm:$0xff]  ;;  %195 = vset.pattern.permute.xlu0 %v224_v17  ;;  %s175_s29 = sshll.u32 %s225_s28, 4  ;;  %s176_s29 = int_to_ptr.vmem [resolvable:$true] %s175_s29 }
   0xa   :  { %126 = vmatpush.msra.mxu2 %v103_v7  ;;  %v135_v16 = vld [vmem:[#allocation2] sm:$0x1] }
   0xb   :  { %138 = vperm.xlu0 %195, %v135_v16   ;;  %v197_v18 = vld [vmem:[%s324_s6] ss:$0 sm:$0xff] }
   0xc   :  { %127 = vmatpush.msra.mxu2 %v102_v8  ;;  %v134_v22 = vld [vmem:[%s325_s7] sm:$0x1] }
   0xe   :  { %128 = vmatpush.msra.mxu2 %v101_v9 }
  0x7d   :  { %v139_v23 = vpop.permute.xlu0 %138 }
  0x7e   :  { %v141_v24 = vperm.slane %v139_v23, 0 }
  0x83   :  { %v65_v10 = vpop.f32.mrf.mxu0 }
  0x85   :  { %v92_v12 = vpop.f32.mrf.mxu1 }
  0x86   :  { %v93_v13 = vadd.f32 %v92_v12, %v65_v10 }
  0x88   :  { %v99_v14 = vadd.f32 %v196_v11, %v93_v13 }
  0x8a   :  { %v100_v15 = vmax.f32 %v99_v14, 0.0 }
  0x8c   :  { %190 = vmatmul.msk.f32.vlgmr.msra.gmra.mxu2 %vm109_vm3, %v100_v15 }
 0x10f   :  { %v130_v19 = vpop.f32.mrf.mxu2 }
 0x110   :  { %v131_v20 = vadd.f32 %v197_v18, %v130_v19 }
 0x112   :  { %v133_v21 = vmax.f32 %v131_v20, 0.0 }
 0x114   :  { %191 = vmatpush.xpose.msk.msra.mxu3 %vm109_vm3, %v133_v21 }
 0x117   :  { %192 = vmatmul.msk.f32.vlgmr.msra.gmra.mxu3 %vm109_vm3, %v134_v22 }
 0x19a   :  { %v165_v25 = vpop.f32.mrf.mxu3 }
 0x19b   :  { %v166_v26 = vadd.f32 %v165_v25, %v141_v24 }
 0x19d   :  { %169 = vst.msk [vmem:[#allocation3] sm:$0x1] %vm168_vm4, %v166_v26 }
 0x19e   :  { %180 = dma.vmem_to_hbm [thread:$0]  %s176_s29, 16, %s178_s11, [#allocation4]  }
 0x19f   :  { %222 = dma.done.wait [#allocation4], 16  }
 0x1a0   :  { %223 = vsyncadd [#allocation4], 4294967280 }
 0x1a1   :  { %185 = vsyncpa [#allocation4], 1 }

</bundles_post_ra>
